<compile_context>
chip_gen: v6e
topology: v6e:2x2x1
jax: 0.10.0
libtpu: 0.0.40
codegen_flags: <defaults>
</compile_context>

<pallas_src>
import math

import jax
import jax.numpy as jnp
from jax.experimental import pallas as pl
from jax.experimental.pallas import tpu as pltpu

LANES = 128  # every feature / hidden dim is zero-padded to the 128-lane vreg width


def _gin_layer_kernel(a_ref, f_ref, b1_ref, w2_ref, b2_ref, o_ref, acc_ref):
    """One GIN layer: out = ReLU((A+I) @ F + b1) @ W2 + b2.  Grid = (dst block i, src block k)."""
    k = pl.program_id(1)

    # ---- accumulator init at the start of the reduction over src blocks ----
    @pl.when(k == 0)
    def _():
        acc_ref[...] = jnp.zeros_like(acc_ref)

    # ---- aggregation: acc += (A+I)[i-block, k-block] @ F[k-block] ----
    # A lives in HBM as int8 (exact small multiplicities); upcast via f32 -> bf16 so the
    # matmul is pure bf16 x bf16 -> f32 (single-pass MXU rate on all generations).
    a_blk = a_ref[...].astype(jnp.float32).astype(jnp.bfloat16)
    acc_ref[...] += jnp.dot(a_blk, f_ref[...], preferred_element_type=jnp.float32)

    # ---- finalize: bias + ReLU + output projection on the completed dst block ----
    @pl.when(k == pl.num_programs(1) - 1)
    def _():
        hid = jnp.maximum(acc_ref[...] + b1_ref[...], 0.0)
        # Runs once per dst block (vs n_pad/tk aggregation matmuls), so the f32 MXU path
        # here is noise and keeps full accuracy of the MLP weights.
        out = jnp.dot(hid, w2_ref[...], preferred_element_type=jnp.float32) + b2_ref[...]
        o_ref[...] = out.astype(o_ref.dtype)


def _gin_layer(adj_i8, feats_bf16, b1, w2, b2, *, out_dtype, tm, tk):
    """Run one GIN layer over the padded graph. adj_i8: [n_pad,n_pad] int8 (= A+I)."""
    n_pad = adj_i8.shape[0]
    assert n_pad % tm == 0 and n_pad % tk == 0
    grid = (n_pad // tm, n_pad // tk)
    out_itemsize = jnp.dtype(out_dtype).itemsize

    # Double-buffered pipeline residency + accumulator, with headroom.
    budget = (2 * tm * tk * 1                                 # A tiles (int8)
              + 2 * tk * LANES * 2                            # feature tiles (bf16)
              + 2 * (LANES * LANES * 4 + 2 * LANES * 4)       # MLP params (f32), constant-index
              + 2 * tm * LANES * out_itemsize                 # output tiles
              + tm * LANES * 4)                               # f32 accumulator scratch
    # TODO(synk): per-generation tuning — v5e/v6e can afford ~96-112 MiB here for even bigger
    #             A tiles; v7x must stay under its 64 MiB physical VMEM.
    vmem_limit = int(min(2 * budget + (8 << 20), 96 << 20))

    cost = pl.CostEstimate(
        flops=2 * n_pad * n_pad * LANES + 2 * n_pad * LANES * LANES,
        transcendentals=0,
        bytes_accessed=(n_pad * n_pad                          # A streamed once (int8)
                        + (n_pad // tm) * n_pad * LANES * 2    # features re-streamed per dst block
                        + n_pad * LANES * out_itemsize         # output
                        + LANES * LANES * 4),                  # MLP weights
    )

    return pl.pallas_call(
        _gin_layer_kernel,
        out_shape=jax.ShapeDtypeStruct((n_pad, LANES), out_dtype),
        grid_spec=pltpu.PrefetchScalarGridSpec(
            num_scalar_prefetch=0,
            grid=grid,
            in_specs=[
                # A tile streamed per (dst, src) block, pipelined behind the MXU.
                pl.BlockSpec((tm, tk), lambda i, k: (i, k)),
                # Feature src block, streamed (no full-array VMEM residency needed).
                pl.BlockSpec((tk, LANES), lambda i, k: (k, 0)),
                # Tiny MLP params: constant block index -> DMA'd once, VMEM-resident.
                pl.BlockSpec((1, LANES), lambda i, k: (0, 0)),
                pl.BlockSpec((LANES, LANES), lambda i, k: (0, 0)),
                pl.BlockSpec((1, LANES), lambda i, k: (0, 0)),
            ],
            out_specs=pl.BlockSpec((tm, LANES), lambda i, k: (i, 0)),
            scratch_shapes=[pltpu.VMEM((tm, LANES), jnp.float32)],
        ),
        compiler_params=pltpu.CompilerParams(
            # dst blocks are independent -> shard across TensorCores on v7x megacore;
            # the src axis is the reduction -> sequential.
            dimension_semantics=("parallel", "arbitrary"),
            vmem_limit_bytes=vmem_limit,
        ),
        cost_estimate=cost,
    )(adj_i8, feats_bf16, b1, w2, b2)


def _round_up(v, m):
    return ((v + m - 1) // m) * m


def _pad2d(w, rows, cols):
    return jnp.pad(w, ((0, rows - w.shape[0]), (0, cols - w.shape[1])))


def _pad_bias(b):
    return jnp.pad(b, (0, LANES - b.shape[0])).reshape(1, LANES)


def gnn_forward(x, edge_index, params1, params2, *, tm=512, tk=2048):
    """Full GNN forward: two GINConv layers, each a tiled Pallas kernel call."""
    n, _ = x.shape
    w11, b11, w12, b12 = params1
    w21, b21, w22, b22 = params2

    # int8 A tiles pack (32,128) per vreg; keep tiles aligned and pick tm|tk (or tk|tm)
    # so the lcm-based padding stays minimal.
    assert tm % 32 == 0 and tk % 128 == 0, "A tile must respect int8 (32,128) packing"
    n_pad = _round_up(n, math.lcm(tm, tk))

    # Dense (A + I)[dst, src] built with ONE scatter-add (edges + diagonal) and one cast.
    # NOTE: assumes per-entry edge multiplicity + self-loop fits in int8 (<= 127).
    src, dst = edge_index[0], edge_index[1]
    diag = jnp.arange(n, dtype=dst.dtype)
    rows = jnp.concatenate([dst, diag])
    cols = jnp.concatenate([src, diag])
    adj = (jnp.zeros((n_pad, n_pad), jnp.int32)
           .at[rows, cols].add(1)
           .astype(jnp.int8))

    # Layer 1: fold Linear(3,32) into the features and W21 into the output projection,
    # so both layers share the kernel  out = ReLU((A+I)F + b1) @ W2 + b2:
    #   F1 = X @ W11,  W2_l1 = W12 @ W21,  b2_l1 = b12 @ W21   (exact: matmul associativity)
    # Layer-1 output is then exactly H1 @ W21, i.e. layer 2's pre-aggregation features.
    f1 = (jnp.zeros((n_pad, LANES), jnp.float32)
          .at[:n, :w11.shape[1]].set(x @ w11)
          .astype(jnp.bfloat16))

    b1_l1 = _pad_bias(b11)
    w2_l1 = _pad2d(w12 @ w21, LANES, LANES)
    b2_l1 = _pad_bias(b12 @ w21)

    b1_l2 = _pad_bias(b21)
    w2_l2 = _pad2d(w22, LANES, LANES)
    b2_l2 = _pad_bias(b22)

    # Layer 1 -> bf16 intermediate in HBM (cheap, lane-dense); layer 2 -> f32 final output.
    g = _gin_layer(adj, f1, b1_l1, w2_l1, b2_l1, out_dtype=jnp.bfloat16, tm=tm, tk=tk)
    out = _gin_layer(adj, g, b1_l2, w2_l2, b2_l2, out_dtype=jnp.float32, tm=tm, tk=tk)
    return out[:n]


def _linear_init(key, fan_in, fan_out):
    """Deterministic init mimicking torch.nn.Linear default (uniform +/- 1/sqrt(fan_in))."""
    kw, kb = jax.random.split(key)
    bound = 1.0 / jnp.sqrt(jnp.float32(fan_in))
    w = jax.random.uniform(kw, (fan_in, fan_out), jnp.float32, -bound, bound)
    b = jax.random.uniform(kb, (fan_out,), jnp.float32, -bound, bound)
    return w, b


def init_gnn_params(key):
    k1, k2, k3, k4 = jax.random.split(key, 4)
    # conv1: Linear(3, 32) -> ReLU -> Linear(32, 64)
    w11, b11 = _linear_init(k1, 3, 32)
    w12, b12 = _linear_init(k2, 32, 64)
    # conv2: Linear(64, 64) -> ReLU -> Linear(64, 128)
    w21, b21 = _linear_init(k3, 64, 64)
    w22, b22 = _linear_init(k4, 64, 128)
    return (w11, b11, w12, b12), (w21, b21, w22, b22)


def gnn_forward_ref(x, edge_index, params1, params2):
    """Plain-JAX f32 reference for verification."""
    n = x.shape[0]
    adj = jnp.zeros((n, n), jnp.float32).at[edge_index[1], edge_index[0]].add(1.0)

    def layer(h, p):
        w1, b1, w2, b2 = p
        h = adj @ h + h
        h = jnp.maximum(h @ w1 + b1, 0.0)
        return h @ w2 + b2

    return layer(layer(x, params1), params2)


if __name__ == "__main__":
    key = jax.random.PRNGKey(0)
    k_param, k_x, k_src, k_dst = jax.random.split(key, 4)

    # Small synthetic graph: 200 nodes, 3 input features (matching Linear(3, 32)), 800 edges.
    num_nodes = 200
    num_edges = 800
    x = jax.random.normal(k_x, (num_nodes, 3), jnp.float32)
    src = jax.random.randint(k_src, (num_edges,), 0, num_nodes, jnp.int32)
    dst = jax.random.randint(k_dst, (num_edges,), 0, num_nodes, jnp.int32)
    edge_index = jnp.stack([src, dst], axis=0)  # [2, E], row 0 = source, row 1 = target

    params1, params2 = init_gnn_params(k_param)

    # Small tiles so the demo actually exercises the 2-D grid (4 dst-blocks x 2 src-blocks
    # per layer); production defaults are tm=512, tk=2048.
    out = gnn_forward(x, edge_index, params1, params2, tm=64, tk=128)
    out = jax.block_until_ready(out)

    ref = gnn_forward_ref(x, edge_index, params1, params2)
    assert out.shape == (num_nodes, 128), out.shape
    max_err = float(jnp.max(jnp.abs(out - ref)))
    scale = float(jnp.max(jnp.abs(ref)))
    # Features / intermediate are stored in bf16 (f32 accumulation), so compare with a
    # bf16-appropriate tolerance against the f32 reference.
    assert max_err <= 2e-2 * scale + 1e-1, (max_err, scale)

    print("KERNEL_OK")
</pallas_src>

<mosaic_0001>
module attributes {stable_mosaic.version = 11 : i64} {
  func.func @_gin_layer_kernel(%arg0: i32, %arg1: i32, %arg2: memref<64x128xi8, #tpu.memory_space<vmem>>, %arg3: memref<128x128xbf16, #tpu.memory_space<vmem>>, %arg4: memref<1x128xf32, #tpu.memory_space<vmem>>, %arg5: memref<128x128xf32, #tpu.memory_space<vmem>>, %arg6: memref<1x128xf32, #tpu.memory_space<vmem>>, %arg7: memref<64x128xbf16, #tpu.memory_space<vmem>>, %arg8: memref<64x128xf32, #tpu.memory_space<vmem>>) attributes {dimension_semantics = [#tpu.dimension_semantics<parallel>, #tpu.dimension_semantics<arbitrary>], iteration_bounds = array<i64: 4, 2>, scalar_prefetch = 0 : i64, scratch_operands = 1 : i64, tpu.core_type = #tpu.core_type<tc>, window_params = [{transform_indices = @transform_0, window_bounds = array<i64: 64, 128>}, {transform_indices = @transform_1, window_bounds = array<i64: 128, 128>}, {pipeline_mode = #tpu.pipeline_mode<synchronous>, transform_indices = @transform_2, window_bounds = array<i64: 1, 128>}, {pipeline_mode = #tpu.pipeline_mode<synchronous>, transform_indices = @transform_3, window_bounds = array<i64: 128, 128>}, {pipeline_mode = #tpu.pipeline_mode<synchronous>, transform_indices = @transform_4, window_bounds = array<i64: 1, 128>}, {transform_indices = @transform_5, window_bounds = array<i64: 64, 128>}]} {
    %c0_i32 = arith.constant 0 : i32
    %0 = arith.cmpi eq, %arg1, %c0_i32 : i32
    %1 = arith.extui %0 : i1 to i32
    %c0_i32_0 = arith.constant 0 : i32
    %2 = arith.cmpi ne, %1, %c0_i32_0 : i32
    scf.if %2 {
      %cst_9 = arith.constant 0.000000e+00 : f32
      %14 = vector.broadcast %cst_9 : f32 to vector<64x128xf32>
      %c0_10 = arith.constant 0 : index
      %c0_11 = arith.constant 0 : index
      %15 = vector.load %arg8[%c0_10, %c0_11] : memref<64x128xf32, #tpu.memory_space<vmem>>, vector<64x128xf32>
      tpu.vector_store %arg8[%c0_10, %c0_11], %14 {strides = array<i32>} : memref<64x128xf32, #tpu.memory_space<vmem>>, vector<64x128xf32>,
    } else {
    }
    %c0 = arith.constant 0 : index
    %c0_1 = arith.constant 0 : index
    %3 = vector.load %arg2[%c0, %c0_1] : memref<64x128xi8, #tpu.memory_space<vmem>>, vector<64x128xi8>
    %4 = arith.sitofp %3 : vector<64x128xi8> to vector<64x128xf32>
    %5 = arith.truncf %4 : vector<64x128xf32> to vector<64x128xbf16>
    %c0_2 = arith.constant 0 : index
    %c0_3 = arith.constant 0 : index
    %6 = vector.load %arg8[%c0_2, %c0_3] : memref<64x128xf32, #tpu.memory_space<vmem>>, vector<64x128xf32>
    %c0_4 = arith.constant 0 : index
    %c0_5 = arith.constant 0 : index
    %7 = vector.load %arg3[%c0_4, %c0_5] : memref<128x128xbf16, #tpu.memory_space<vmem>>, vector<128x128xbf16>
    %cst = arith.constant dense<0.000000e+00> : vector<64x128xf32>
    %8 = tpu.matmul %5, %7, %cst {dimension_numbers = #tpu.dot_dimension_numbers<[1], [0], [0], [1], [0, 0, 1, 1], [], []>} : vector<64x128xbf16>, vector<128x128xbf16>, vector<64x128xf32> -> vector<64x128xf32>
    %9 = arith.addf %6, %8 : vector<64x128xf32>
    %c0_6 = arith.constant 0 : index
    %c0_7 = arith.constant 0 : index
    %10 = vector.load %arg8[%c0_6, %c0_7] : memref<64x128xf32, #tpu.memory_space<vmem>>, vector<64x128xf32>
    tpu.vector_store %arg8[%c0_6, %c0_7], %9 {strides = array<i32>} : memref<64x128xf32, #tpu.memory_space<vmem>>, vector<64x128xf32>,
    %c1_i32 = arith.constant 1 : i32
    %11 = arith.cmpi eq, %arg1, %c1_i32 : i32
    %12 = arith.extui %11 : i1 to i32
    %c0_i32_8 = arith.constant 0 : i32
    %13 = arith.cmpi ne, %12, %c0_i32_8 : i32
    scf.if %13 {
      %c0_9 = arith.constant 0 : index
      %c0_10 = arith.constant 0 : index
      %14 = vector.load %arg8[%c0_9, %c0_10] : memref<64x128xf32, #tpu.memory_space<vmem>>, vector<64x128xf32>
      %c0_11 = arith.constant 0 : index
      %c0_12 = arith.constant 0 : index
      %15 = vector.load %arg4[%c0_11, %c0_12] : memref<1x128xf32, #tpu.memory_space<vmem>>, vector<1x128xf32>
      %16 = vector.broadcast %15 : vector<1x128xf32> to vector<64x128xf32>
      %17 = arith.addf %14, %16 : vector<64x128xf32>
      %cst_13 = arith.constant 0.000000e+00 : f32
      %18 = vector.broadcast %cst_13 : f32 to vector<64x128xf32>
      %19 = arith.maximumf %17, %18 : vector<64x128xf32>
      %c0_14 = arith.constant 0 : index
      %c0_15 = arith.constant 0 : index
      %20 = vector.load %arg5[%c0_14, %c0_15] : memref<128x128xf32, #tpu.memory_space<vmem>>, vector<128x128xf32>
      %cst_16 = arith.constant dense<0.000000e+00> : vector<64x128xf32>
      %21 = tpu.matmul %19, %20, %cst_16 {dimension_numbers = #tpu.dot_dimension_numbers<[1], [0], [0], [1], [0, 0, 1, 1], [], []>} : vector<64x128xf32>, vector<128x128xf32>, vector<64x128xf32> -> vector<64x128xf32>
      %c0_17 = arith.constant 0 : index
      %c0_18 = arith.constant 0 : index
      %22 = vector.load %arg6[%c0_17, %c0_18] : memref<1x128xf32, #tpu.memory_space<vmem>>, vector<1x128xf32>
      %23 = vector.broadcast %22 : vector<1x128xf32> to vector<64x128xf32>
      %24 = arith.addf %21, %23 : vector<64x128xf32>
      %25 = arith.truncf %24 : vector<64x128xf32> to vector<64x128xbf16>
      %c0_19 = arith.constant 0 : index
      %c0_20 = arith.constant 0 : index
      %26 = vector.load %arg7[%c0_19, %c0_20] : memref<64x128xbf16, #tpu.memory_space<vmem>>, vector<64x128xbf16>
      tpu.vector_store %arg7[%c0_19, %c0_20], %25 {strides = array<i32>} : memref<64x128xbf16, #tpu.memory_space<vmem>>, vector<64x128xbf16>,
    } else {
    }
    return
  }
  func.func @transform_0(%arg0: i32, %arg1: i32) -> (i32, i32) {
    %c0_i32 = arith.constant 0 : i32
    return %arg0, %arg1 : i32, i32
  }
  func.func @transform_1(%arg0: i32, %arg1: i32) -> (i32, i32) {
    %c0_i32 = arith.constant 0 : i32
    %c0_i32_0 = arith.constant 0 : i32
    return %arg1, %c0_i32 : i32, i32
  }
  func.func @transform_2(%arg0: i32, %arg1: i32) -> (i32, i32) {
    %c0_i32 = arith.constant 0 : i32
    %c0_i32_0 = arith.constant 0 : i32
    %c0_i32_1 = arith.constant 0 : i32
    return %c0_i32, %c0_i32_0 : i32, i32
  }
  func.func @transform_3(%arg0: i32, %arg1: i32) -> (i32, i32) {
    %c0_i32 = arith.constant 0 : i32
    %c0_i32_0 = arith.constant 0 : i32
    %c0_i32_1 = arith.constant 0 : i32
    return %c0_i32, %c0_i32_0 : i32, i32
  }
  func.func @transform_4(%arg0: i32, %arg1: i32) -> (i32, i32) {
    %c0_i32 = arith.constant 0 : i32
    %c0_i32_0 = arith.constant 0 : i32
    %c0_i32_1 = arith.constant 0 : i32
    return %c0_i32, %c0_i32_0 : i32, i32
  }
  func.func @transform_5(%arg0: i32, %arg1: i32) -> (i32, i32) {
    %c0_i32 = arith.constant 0 : i32
    %c0_i32_0 = arith.constant 0 : i32
    return %arg0, %c0_i32 : i32, i32
  }
}

</mosaic_0001>

<bundles_post_ra>
// kernel: tpu_custom_call.1
= control target key start
LH: loop header
LB: loop body
LE: loop exit
PB: predicated region body
PF: predicated region fallthrough
CT: control target
= control target key end

     0   :  { %s1821_s0 = inlined_call_operand.hbm [shape: s8[256,256], index: 0, kind: input, shape index: {}]   ;;  %s1822_s1 = inlined_call_operand.hbm [shape: bf16[256,128], index: 1, kind: input, shape index: {}]   ;;  %s1823_s2 = inlined_call_operand.vmem [shape: f32[1,128], index: 2, kind: input, shape index: {}]   ;;  %s1824_s3 = inlined_call_operand.hbm [shape: f32[128,128], index: 3, kind: input, shape index: {}]   ;;  %s1825_s4 = inlined_call_operand.vmem [shape: f32[1,128], index: 4, kind: input, shape index: {}]   ;;  %s1826_s5 = inlined_call_operand.hbm [shape: bf16[256,128], index: 5, kind: output, shape index: {}]  }
   0x1   :  { %1844 = sst [smem:[#allocation23_spill]] %s1823_s2 }
   0x2   :  { %1845 = sst [smem:[#allocation24_spill]] %s1824_s3 }
   0x3   :  { %1846 = sst [smem:[#allocation25_spill]] %s1825_s4 }
   0x4   :  { %1847 = sst [smem:[#allocation26_spill]] %s1826_s5 }
   0x5   :  { %10 = vsyncpa [#allocation4], 0 }
   0x6   :  { %12 = vsyncpa [#allocation4 + $0x1], 0 }
   0x7   :  { %13 = vsyncpa [#allocation7], 0 }
   0x8   :  { %15 = vsyncpa [#allocation7 + $0x1], 0 }
   0x9   :  { %16 = vsyncpa [#allocation5], 0 }
   0xa   :  { %18 = vsyncpa [#allocation5 + $0x1], 0  ;;  %s1487_s18 = smov 0   ;;  %s1489_s19 = smov 0  }
   0xb   :  { %s1491_s20 = smov 0   ;;  %s1493_s21 = smov 0  }
   0xc   :  { %s1495_s22 = smov 0   ;;  %s1497_s23 = smov 0  }
   0xd   :  { %s1499_s24 = smov 0   ;;  %s1501_s25 = smov 0  }
   0xe   :  { %s1503_s26 = smov 0   ;;  %s1505_s27 = smov 0  }
   0xf   :  { %s1507_s28 = smov 0   ;;  %s1509_s29 = smov 0  }
  0x10   :  { %s1511_s30 = smov 0   ;;  %s1513_s6 = smov 0  }
  0x11 LB: > { %1848 = sst [smem:[#allocation14_spill]] %s1391_s18  ;;  %s1554_s7 = sadd.s32 4294967295, %s1443_s6   ;;  %s1443_s6 = sphi %s1513_s6, %s24_s6   ;;  %s1439_s30 = sphi %s1511_s30, %s1903_s30   ;;  %s1435_s29 = sphi %s1509_s29, %s1902_s29   ;;  %s1431_s28 = sphi %s1507_s28, %s1901_s28   ;;  %s1427_s27 = sphi %s1505_s27, %s1900_s27   ;;  %s1423_s26 = sphi %s1503_s26, %s1899_s26   ;;  %s1419_s25 = sphi %s1501_s25, %s1898_s25   ;;  %s1415_s24 = sphi %s1499_s24, %s1897_s24   ;;  %s1411_s23 = sphi %s1497_s23, %s1896_s23   ;;  %s1407_s22 = sphi %s1495_s22, %s1895_s22   ;;  %s1403_s21 = sphi %s1493_s21, %s1894_s21   ;;  %s1399_s20 = sphi %s1491_s20, %s1893_s20   ;;  %s1395_s19 = sphi %s1489_s19, %s1892_s19   ;;  %s1391_s18 = sphi %s1487_s18, %s1889_s18  }
  0x12   : > { %1849 = sst [smem:[#allocation15_spill]] %s1395_s19  ;;  %s824_s8 = sadd.s32 4294967294, %s1443_s6  }
  0x13   : > { %1850 = sst [smem:[#allocation16_spill]] %s1427_s27  ;;  %p58_p0 = scmp.ne.s32.totalorder %s1419_s25, %s1415_s24 }
  0x14   : > { %1851 = sst [smem:[#allocation17_spill]] %s1431_s28  ;;  %p1843_p1 = scmp.eq.s32.totalorder %s1554_s7, 0 }
  0x15   : > { %1852 = sst [smem:[#allocation18_spill]] %s1554_s7  ;;  %p84_p2 = scmp.ne.s32.totalorder %s1407_s22, %s1403_s21 }
  0x16   : > { %p1563_p3 = por %p1843_p1, %p58_p0  ;;  %p170_p4 = scmp.ne.s32.totalorder %s1399_s20, %s1395_s19 }
  0x17   : > { %p1571_p5 = por %p84_p2, %p1843_p1  ;;  %p171_p6 = scmp.eq.s32.totalorder %s1554_s7, 7 }
  0x18   : > { %p176_p7 = scmp.ne.s32.totalorder %s1395_s19, %s1391_s18  ;;  %p177_p8 = scmp.eq.s32.totalorder %s824_s8, 7 }
  0x19   : > { %s1854_s11 = scalar_select %p1571_p5, 1, 0 }
  0x1a   : > { %p1578_p9 = por %p171_p6, %p170_p4  ;;  %p825_p10 = scmp.ge.s32.totalorder %s1443_s6, 1 }
  0x1b   : > { %1855 = sst [smem:[#allocation19_spill]] %s1854_s11  ;;  %p1583_p11 = por %p177_p8, %p176_p7 }
  0x1c   : > { %s1856_s12 = scalar_select %p1578_p9, 1, 0 }
  0x1d   : > { %s1858_s13 = scalar_select %p1583_p11, 1, 0 }
  0x1e   : > { %1857 = sst [smem:[#allocation20_spill]] %s1856_s12  ;;  %p184_p12 = scmp.lt.s32.totalorder %s1443_s6, 9 }
  0x1f   : > { %1859 = sst [smem:[#allocation21_spill]] %s1858_s13  ;;  %s1445_s15 = smov [#allocation8]  }
  0x20   : > { %p1588_p13 = pnand %p825_p10, %p184_p12  ;;  %s199_s16 = sshll.u32 %s1445_s15, 4  ;;  %s200_s16 = int_to_ptr.vmem [resolvable:$true] %s199_s16 }
  0x21   : > { %s1220_s17 = scalar_lea.vmem %s200_s16, 2048  ;;  %p1228_p9 = scmp.lt.s32.totalorder %s200_s16, %s200_s16 }
  0x22   : > { %p1061_p0 = pneg %p1588_p13  ;;  %p1221_p6 = scmp.ne.s32.totalorder %s200_s16, %s1220_s17 }
  0x23   : > { %p1229_p11 = scmp.lt.s32.totalorder %s1220_s17, %s1220_s17 }
  0x24   : > { %p1062_p2 = pnand %p1061_p0, %p1843_p1 }
  0x25   : > { %p1230_p5 = por %p1229_p11, %p1228_p9 }
  0x26   : > { %p1211_p4 = pneg %p1062_p2 }
  0x28   : > { %p1223_p7 = pnand %p1221_p6, %p1211_p4 }
  0x2a   : > { %p1224_p8 = pneg %p1223_p7 }
  0x2c   : > { %p1231_p10 = pnand %p1230_p5, %p1224_p8 }
  0x2e   : > { %1234 = shalt.err (!%p1231_p10)
}
  0x2f   : > { %s1831_s21 = smov 128   ;;  %s1832_s24 = smov 8  }
  0x30   : > { %s1861_s3 = sld [smem:[#allocation24_spill]]  ;;  %s33_s17 = sadd.s32 1, %s1435_s29 }
  0x31   : > { %p34_p5 = scmp.ge.s32.totalorder %s33_s17, 2  ;;  %s36_s9 = sadd.s32 1, %s1439_s30 }
  0x32   : > { %s45_s13 = sadd.s32 1, %s1423_s26  ;;  %p52_p9 = scmp.ne.s32.totalorder %s1423_s26, %s1419_s25 }
  0x33   : > { %s1905_s17 = smov (%p34_p5, %s33_s17), 0  ;;  %s1907_s9 = smov (!%p34_p5, %s36_s9), %s1439_s30 }
  0x34   : > { %1862 = sst [smem:[#allocation22_spill]] %s1905_s17  ;;  %s1612_s18 = ssub.s32 %s1435_s29, %s1905_s17 }
  0x35   : > { %p53_p11 = scmp.eq.s32.totalorder %s1443_s6, 0  ;;  %p38_p12 = scmp.ge.s32.totalorder %s1907_s9, 4 }
  0x36   : > { %1064 = dma.hbm_to_vmem [thread:$0]  (!%p1062_p2), %s1861_s3, 2048, %s200_s16, [#allocation7], %s1831_s21, %s1831_s21, %s1832_s24  }
  0x37   : > { %p69_p0 = scmp.eq.s32.totalorder %s1612_s18, 0  ;;  %p1618_p2 = por %p53_p11, %p52_p9 }
  0x38   : > { %p1077_p4 = scmp.lt.s32.totalorder %s1443_s6, 8  ;;  %s1909_s9 = smov (%p38_p12, %s1907_s9), 0 }
  0x39   : > { %s216_s8 = sand.u32 1, %s1423_s26   ;;  %s865_s15 = sshll.u32 %s1439_s30, 2 }
  0x3a   : > { %s40_s21 = ssub.s32 %s1439_s30, %s1909_s9  ;;  %s828_s3 = sshll.u32 %s216_s8, 4 }
  0x3b   : > { %s42_s24 = sor.u32 %s1612_s18, %s40_s21  ;;  %p158_p6 = scmp.eq.s32.totalorder %s40_s21, 0 }
  0x3c   : > { %p43_p7 = scmp.eq.s32.totalorder %s42_s24, 0  ;;  %s1864_s17 = sadd.s32 1, %s1399_s20 }
  0x3d   : > { %s1633_s5 = scalar_select %p158_p6, %s1399_s20, %s1864_s17  }
  0x3e   : > { %s1636_s12 = scalar_select %p43_p7, %s1423_s26, %s45_s13  }
  0x3f   : > { %s226_s28 = sadd.s32 %s1435_s29, %s865_s15  ;;  %s220_s2 = scalar_lea.vmem [#allocation3], %s828_s3 }
  0x40   : > { %s831_s4 = sshll.u32 %s226_s28, 7  ;;  %s229_s27 = sshll.u32 %s220_s2, 4  ;;  %s230_s27 = int_to_ptr.vmem [resolvable:$true] %s229_s27 }
  0x41   : > { %s228_s7 = scalar_lea.hbm %s1821_s0, %s831_s4  ;;  %p1646_p8 = pnand %p1077_p4, %p1618_p2 }
  0x42   : > { %s217_s17 = scalar_lea.sflag [#allocation4], %s216_s8  ;;  %s1248_s13 = scalar_lea.vmem %s230_s27, 256 }
  0x43   : > { %p1237_p10 = pneg %p1646_p8  ;;  %p1249_p5 = scmp.ne.s32.totalorder %s230_s27, %s1248_s13 }
  0x44   : > { %s1448_s2 = smov [#allocation3]  }
  0x45   : > { %p1251_p9 = pnand %p1249_p5, %p1237_p10  ;;  %s1253_s3 = sshll.u32 %s1448_s2, 4  ;;  %s1254_s3 = int_to_ptr.vmem [resolvable:$false] %s1253_s3 }
  0x46   : > { %s1255_s4 = scalar_lea.vmem %s1254_s3, 512  ;;  %p1256_p6 = scmp.lt.s32.totalorder %s230_s27, %s1254_s3 }
  0x47   : > { %p1252_p12 = pneg %p1251_p9  ;;  %p1257_p7 = scmp.lt.s32.totalorder %s1255_s4, %s1248_s13 }
  0x49   : > { %p1258_p1 = por %p1257_p7, %p1256_p6 }
  0x4b   : > { %p1259_p2 = pnand %p1258_p1, %p1252_p12 }
  0x4d   : > { %1262 = shalt.err (!%p1259_p2)
}
  0x4e   : > { %s1449_s19 = smov 256   ;;  %s1866_s28 = smov 8  }
  0x4f   : > { %s1867_s11 = smov 128   ;;  %s71_s16 = sadd.s32 1, %s1411_s23 }
  0x50   : > { %1068 = dma.hbm_to_vmem [thread:$0]  (!%p1646_p8), %s228_s7, 256, %s230_s27, %s217_s17, %s1449_s19, %s1867_s11, %s1866_s28  }
  0x51   : > { %p78_p10 = scmp.ne.s32.totalorder %s1411_s23, %s1407_s22  ;;  %s241_s15 = sand.u32 1, %s1411_s23  }
  0x52   : > { %s1663_s8 = scalar_select %p69_p0, %s1411_s23, %s71_s16  }
  0x53   : > { %p80_p1 = por %p78_p10, %p53_p11  ;;  %s866_s21 = sshll.u32 %s1435_s29, 10 }
  0x54   : > { %s832_s13 = sshll.u32 %s241_s15, 6  ;;  %s249_s4 = scalar_lea.hbm %s1822_s1, %s866_s21 }
  0x55   : > { %p1674_p5 = pnand %p1077_p4, %p80_p1  ;;  %s243_s27 = scalar_lea.vmem [#allocation6], %s832_s13 }
  0x56   : > { %s250_s7 = sshll.u32 %s243_s27, 4  ;;  %s1869_s18 = sand.u32 1, %s1443_s6   ;;  %s251_s7 = int_to_ptr.vmem [resolvable:$true] %s250_s7 }
  0x57   : > { %s240_s17 = scalar_lea.sflag [#allocation7], %s1869_s18  ;;  %p1265_p11 = pneg %p1674_p5 }
  0x58   : > { %s1276_s19 = scalar_lea.vmem %s251_s7, 1024  ;;  %s1450_s28 = smov [#allocation6]  }
  0x59   : > { %p1277_p0 = scmp.ne.s32.totalorder %s251_s7, %s1276_s19  ;;  %s1281_s11 = sshll.u32 %s1450_s28, 4  ;;  %s1282_s11 = int_to_ptr.vmem [resolvable:$false] %s1281_s11 }
  0x5a   : > { %s1283_s16 = scalar_lea.vmem %s1282_s11, 2048  ;;  %p1284_p4 = scmp.lt.s32.totalorder %s251_s7, %s1282_s11 }
  0x5b   : > { %p1279_p8 = pnand %p1277_p0, %p1265_p11  ;;  %p1285_p12 = scmp.lt.s32.totalorder %s1283_s16, %s1276_s19 }
  0x5d   : > { %p1280_p9 = pneg %p1279_p8  ;;  %p1286_p6 = por %p1285_p12, %p1284_p4 }
  0x5f   : > { %p1287_p7 = pnand %p1286_p6, %p1280_p9 }
  0x61   : > { %1290 = shalt.err (!%p1287_p7)
}
  0x62   : > { %s1451_s15 = smov 64   ;;  %s1452_s21 = smov 4  }
  0x63   : > { %1071 = dma.hbm_to_vmem [thread:$0]  (!%p1674_p5), %s249_s4, 1024, %s251_s7, %s240_s17, %s1451_s15, %s1451_s15, %s1452_s21  }
  0x64   : > { %262 = sbr.rel (%p1588_p13) target bundleno = 639 (0x27f), region = 40  ;;  %s264_s13 = sand.u32 (!%p1588_p13), 1, %s1419_s25  }
  0x65   : > { %s1687_s2 = sshll.u32 (!%p1588_p13), %s264_s13, 4  ;;  %s265_s3 = scalar_lea.sflag (!%p1588_p13), [#allocation4], %s264_s13 }
  0x66   : > { %s268_s27 = scalar_lea.vmem (!%p1588_p13), [#allocation3], %s1687_s2 }
  0x69   : > { %1374 = dma.done.wait (%p1563_p3), %s265_s3, 256  }
  0x6a   : > { %1376 = vsyncadd (%p1563_p3), %s265_s3, 4294967040  ;;  %s1870_s18 = sld [smem:[#allocation18_spill]]  ;;  %s275_s7 = sand.u32 1, %s1407_s22  }
  0x6b   : > { %s1871_s24 = sld [smem:[#allocation19_spill]]  ;;  %s837_s14 = sshll.u32 %s275_s7, 6 }
  0x6c   : > { %s1696_s19 = scalar_lea.vmem [#allocation6], %s837_s14 }
  0x70   : > { %s273_s4 = sand.u32 1, %s1870_s18  }
  0x71   : > { %s274_s17 = scalar_lea.sflag [#allocation7], %s273_s4  ;;  %p1872_p13 = scmp.ne.s32.totalorder %s1871_s24, 0 }
  0x73   : > { %1378 = dma.done.wait (%p1872_p13), %s274_s17, 1024  }
  0x74   : > { %1380 = vsyncadd (%p1872_p13), %s274_s17, 4294966272  ;;  %p1873_p2 = scmp.eq.s32.totalorder %s1870_s18, 0 }
  0x76   : > { %1382 = dma.done.wait (%p1873_p2), [#allocation7], 2048   ;;  %p1874_p10 = pmov %p1873_p2 }
  0x77   : > { %s1875_s10 = sld [smem:[#allocation15_spill]] }
  0x78   : > { %1384 = vsyncadd (%p1874_p10), [#allocation7], 4294965248  ;;  %s1876_s15 = sld [smem:[#allocation16_spill]] }
  0x7d   : > { %s310_s28 = sand.u32 1, %s1875_s10  }
  0x7e   : > { %s839_s11 = sshll.u32 %s310_s28, 5  ;;  %p840_p3 = scmp.ne.s32.totalorder %s1876_s15, 0 }
  0x7f   : > { %s1709_s16 = scalar_lea.vmem [#allocation9], %s839_s11 }
  0x80   : > { %320 = sbr.rel (%p840_p3) target bundleno = 138 (0x8a), region = 56 }
  0x85   : > { %v1453_v0 = vmov 0.0  }
  0x86   : > { %321 = vst [vmem:[#allocation2 + $0x30] sm:$0xff] %v1453_v0  ;;  %322 = vst [vmem:[#allocation2] sm:$0xff] %v1453_v0 }
  0x87   : > { %323 = vst [vmem:[#allocation2 + $0x18] sm:$0xff] %v1453_v0  ;;  %324 = vst [vmem:[#allocation2 + $0x10] sm:$0xff] %v1453_v0 }
  0x88   : > { %325 = vst [vmem:[#allocation2 + $0x8] sm:$0xff] %v1453_v0  ;;  %326 = vst [vmem:[#allocation2 + $0x20] sm:$0xff] %v1453_v0 }
  0x89   : > { %327 = vst [vmem:[#allocation2 + $0x28] sm:$0xff] %v1453_v0  ;;  %328 = vst [vmem:[#allocation2 + $0x38] sm:$0xff] %v1453_v0 }
  0x8a PF: > { %v1201_v1 = vld [vmem:[%s1696_s19 + $0x38] sm:$0xff]   ;;  %v1202_v2 = vld [vmem:[%s1696_s19 + $0x30] sm:$0xff]   ;;  %v1203_v3 = vld [vmem:[%s1696_s19 + $0x28] sm:$0xff]   ;;  %s1877_s21 = sld [smem:[#allocation16_spill]] }
  0x8b   : > { %935 = vmatprep.subr.bf16.mxu0 %v1201_v1  ;;  %1003 = vmatprep.subr.bf16.mxu1 %v1201_v1  ;;  %v1204_v4 = vld [vmem:[%s1696_s19 + $0x20] sm:$0xff]   ;;  %v330_v6 = vld [vmem:[%s268_s27 + $0x8] sm:$0xff]  ;;  %v1206_v10 = vld [vmem:[%s1696_s19 + $0x10] sm:$0xff]  }
  0x8c   : > { %936 = vmatpush3.bf16.msra.mxu0 %v1201_v1  ;;  %1011 = vmatpush3.bf16.msra.mxu1 %v1201_v1  ;;  %v329_v5 = vld [vmem:[%s268_s27] sm:$0xff]  ;;  %v333_v8 = vunpack.c.l.s8.bf16 %v330_v6  ;;  %v1205_v9 = vld [vmem:[%s1696_s19 + $0x18] sm:$0xff]   ;;  %v1207_v11 = vld [vmem:[%s1696_s19 + $0x8] sm:$0xff]   ;;  %v334_v14 = vunpack.c.h.s8.bf16 %v330_v6 }
  0x8d   : > { %937 = vmatprep.subr.bf16.mxu0 %v1202_v2  ;;  %1004 = vmatprep.subr.bf16.mxu1 %v1202_v2  ;;  %v331_v7 = vunpack.c.l.s8.bf16 %v329_v5  ;;  %v1208_v12 = vld [vmem:[%s1696_s19] sm:$0xff]   ;;  %v332_v13 = vunpack.c.h.s8.bf16 %v329_v5  ;;  %v335_v19 = vld [vmem:[#allocation2 + $0x30] sm:$0xff] }
  0x8e   : > { %955 = vmatprep.mubr.bf16.mxu1 %v333_v8  ;;  %v337_v15 = vld [vmem:[#allocation2 + $0x18] sm:$0xff]  ;;  %v338_v25 = vld [vmem:[#allocation2 + $0x10] sm:$0xff]  ;;  %v336_v31 = vld [vmem:[#allocation2] sm:$0xff] }
  0x8f   : > { %951 = vmatprep.mubr.bf16.mxu0 %v331_v7  ;;  %v339_v20 = vld [vmem:[#allocation2 + $0x8] sm:$0xff]  ;;  %v340_v32 = vld [vmem:[#allocation2 + $0x20] sm:$0xff] }
  0x90   : > { %938 = vmatpush3.bf16.msra.mxu0 %v1202_v2  ;;  %1012 = vmatpush3.bf16.msra.mxu1 %v1202_v2  ;;  %v341_v16 = vld [vmem:[#allocation2 + $0x28] sm:$0xff]  ;;  %v342_v26 = vld [vmem:[#allocation2 + $0x38] sm:$0xff]  ;;  %p849_p1 = scmp.ne.s32.totalorder %s1877_s21, 1 }
  0x91   : > { %939 = vmatprep.subr.bf16.mxu0 %v1203_v3  ;;  %1005 = vmatprep.subr.bf16.mxu1 %v1203_v3  ;;  %s1878_s3 = sld [smem:[#allocation23_spill]] (!%p849_p1) }
  0x92   : > { %s1879_s24 = sld [smem:[#allocation25_spill]] (!%p849_p1) }
  0x94   : > { %940 = vmatpush3.bf16.msra.mxu0 %v1203_v3  ;;  %1013 = vmatpush3.bf16.msra.mxu1 %v1203_v3 }
  0x95   : > { %941 = vmatprep.subr.bf16.mxu0 %v1204_v4  ;;  %1006 = vmatprep.subr.bf16.mxu1 %v1204_v4 }
  0x98   : > { %942 = vmatpush3.bf16.msra.mxu0 %v1204_v4  ;;  %1014 = vmatpush3.bf16.msra.mxu1 %v1204_v4 }
  0x99   : > { %943 = vmatprep.subr.bf16.mxu0 %v1205_v9  ;;  %1007 = vmatprep.subr.bf16.mxu1 %v1205_v9 }
  0x9c   : > { %944 = vmatpush3.bf16.msra.mxu0 %v1205_v9  ;;  %1015 = vmatpush3.bf16.msra.mxu1 %v1205_v9 }
  0x9d   : > { %945 = vmatprep.subr.bf16.mxu0 %v1206_v10  ;;  %1008 = vmatprep.subr.bf16.mxu1 %v1206_v10 }
  0xa0   : > { %946 = vmatpush3.bf16.msra.mxu0 %v1206_v10  ;;  %1016 = vmatpush3.bf16.msra.mxu1 %v1206_v10 }
  0xa1   : > { %947 = vmatprep.subr.bf16.mxu0 %v1207_v11  ;;  %1009 = vmatprep.subr.bf16.mxu1 %v1207_v11 }
  0xa4   : > { %948 = vmatpush3.bf16.msra.mxu0 %v1207_v11  ;;  %1017 = vmatpush3.bf16.msra.mxu1 %v1207_v11 }
  0xa5   : > { %949 = vmatprep.subr.bf16.mxu0 %v1208_v12  ;;  %1010 = vmatprep.subr.bf16.mxu1 %v1208_v12 }
  0xa8   : > { %950 = vmatpush3.bf16.msra.mxu0 %v1208_v12  ;;  %1018 = vmatpush3.bf16.msra.mxu1 %v1208_v12 }
  0xab   : > { %952 = vmatmul.mubr.bf16.vlgmr.msra.gmra.mxu0 %v332_v13  ;;  %956 = vmatmul.mubr.bf16.vlgmr.msra.gmra.mxu1 %v334_v14 }
 0x16b   : > { %v953_v17 = vpop.f32.mrf.mxu0  ;;  %v957_v18 = vpop.f32.mrf.mxu1 }
 0x16c   : > { %v474_v21 = vadd.f32 %v953_v17, %v337_v15  ;;  %v478_v22 = vadd.f32 %v957_v18, %v341_v16 }
 0x16d   : > { %v441_v23 = vpop.f32.mrf.mxu0  ;;  %v457_v24 = vpop.f32.mrf.mxu1 }
 0x16e   : > { %482 = vst [vmem:[#allocation2 + $0x18] sm:$0xff] %v474_v21  ;;  %486 = vst [vmem:[#allocation2 + $0x28] sm:$0xff] %v478_v22  ;;  %v472_v27 = vadd.f32 %v441_v23, %v335_v19  ;;  %v476_v28 = vadd.f32 %v457_v24, %v339_v20 }
 0x16f   : > { %v954_v29 = vpop.f32.mrf.mxu0  ;;  %v958_v30 = vpop.f32.mrf.mxu1 }
 0x170   : > { %480 = vst [vmem:[#allocation2 + $0x30] sm:$0xff] %v472_v27  ;;  %484 = vst [vmem:[#allocation2 + $0x8] sm:$0xff] %v476_v28  ;;  %v475_v33 = vadd.f32 %v954_v29, %v338_v25  ;;  %v479_v34 = vadd.f32 %v958_v30, %v342_v26  ;;  %491 = sbr.rel (%p849_p1) target bundleno = 611 (0x263), region = 60 }
 0x171   : > { %v444_v35 = vpop.f32.mrf.mxu0  ;;  %v460_v36 = vpop.f32.mrf.mxu1 }
 0x172   : > { %483 = vst [vmem:[#allocation2 + $0x10] sm:$0xff] %v475_v33  ;;  %487 = vst [vmem:[#allocation2 + $0x38] sm:$0xff] %v479_v34  ;;  %v473_v37 = vadd.f32 %v444_v35, %v336_v31  ;;  %v477_v38 = vadd.f32 %v460_v36, %v340_v32 }
 0x174   : > { %481 = vst [vmem:[#allocation2] sm:$0xff] %v473_v37  ;;  %485 = vst [vmem:[#allocation2 + $0x20] sm:$0xff] %v477_v38 }
 0x175   : > { %v538_v39 = vld [vmem:[#allocation8 + $0x78] sm:$0xff]  ;;  %v537_v40 = vld [vmem:[#allocation8 + $0x70] sm:$0xff]  ;;  %v536_v41 = vld [vmem:[#allocation8 + $0x68] sm:$0xff] }
 0x176   : > { %959 = vmatprep.subr.mxu0 %v538_v39  ;;  %1019 = vmatprep.subr.mxu1 %v538_v39  ;;  %v535_v42 = vld [vmem:[#allocation8 + $0x60] sm:$0xff]  ;;  %v534_v43 = vld [vmem:[#allocation8 + $0x58] sm:$0xff]  ;;  %v533_v44 = vld [vmem:[#allocation8 + $0x50] sm:$0xff] }
 0x177   : > { %960 = vmatpush3.msra.mxu0 %v538_v39  ;;  %1035 = vmatpush3.msra.mxu1 %v538_v39  ;;  %v532_v45 = vld [vmem:[#allocation8 + $0x48] sm:$0xff]  ;;  %v531_v46 = vld [vmem:[#allocation8 + $0x40] sm:$0xff]  ;;  %v530_v47 = vld [vmem:[#allocation8 + $0x38] sm:$0xff] }
 0x178   : > { %961 = vmatprep.subr.mxu0 %v537_v40  ;;  %1020 = vmatprep.subr.mxu1 %v537_v40  ;;  %v529_v48 = vld [vmem:[#allocation8 + $0x30] sm:$0xff]  ;;  %v528_v49 = vld [vmem:[#allocation8 + $0x28] sm:$0xff]  ;;  %v527_v50 = vld [vmem:[#allocation8 + $0x20] sm:$0xff] }
 0x179   : > { %962 = vmatpush3.msra.mxu0 %v537_v40  ;;  %1036 = vmatpush3.msra.mxu1 %v537_v40  ;;  %v526_v51 = vld [vmem:[#allocation8 + $0x18] sm:$0xff]  ;;  %v492_v52 = vld [vmem:[#allocation2 + $0x30] sm:$0xff]  ;;  %v850_v53 = vld [vmem:[%s1878_s3] ss:$0 sm:$0xff] }
 0x17a   : > { %963 = vmatprep.subr.mxu0 %v536_v41  ;;  %1021 = vmatprep.subr.mxu1 %v536_v41  ;;  %v496_v54 = vld [vmem:[#allocation2 + $0x8] sm:$0xff]  ;;  %v525_v57 = vld [vmem:[#allocation8 + $0x10] sm:$0xff]  ;;  %v494_v58 = vld [vmem:[#allocation2 + $0x18] sm:$0xff]  ;;  %v507_v60 = vadd.f32 %v850_v53, %v492_v52 }
 0x17b   : > { %964 = vmatpush3.msra.mxu0 %v536_v41  ;;  %1037 = vmatpush3.msra.mxu1 %v536_v41  ;;  %v493_v55 = vld [vmem:[#allocation2] sm:$0xff]  ;;  %v498_v59 = vld [vmem:[#allocation2 + $0x28] sm:$0xff]  ;;  %v511_v61 = vadd.f32 %v850_v53, %v496_v54  ;;  %v509_v1 = vadd.f32 %v850_v53, %v494_v58  ;;  %v495_v3 = vld [vmem:[#allocation2 + $0x10] sm:$0xff] }
 0x17c   : > { %965 = vmatprep.subr.mxu0 %v535_v42  ;;  %1022 = vmatprep.subr.mxu1 %v535_v42  ;;  %v497_v56 = vld [vmem:[#allocation2 + $0x20] sm:$0xff]  ;;  %v524_v62 = vld [vmem:[#allocation8 + $0x8] sm:$0xff]  ;;  %v508_v63 = vadd.f32 %v850_v53, %v493_v55  ;;  %v513_v2 = vadd.f32 %v850_v53, %v498_v59  ;;  %v499_v4 = vld [vmem:[#allocation2 + $0x38] sm:$0xff]  ;;  %v515_v6 = vmax.f32 %v507_v60, 0.0  ;;  %v510_v10 = vadd.f32 %v850_v53, %v495_v3 }
 0x17d   : > { %966 = vmatpush3.msra.mxu0 %v535_v42  ;;  %1038 = vmatpush3.msra.mxu1 %v535_v42  ;;  %v512_v0 = vadd.f32 %v850_v53, %v497_v56  ;;  %v523_v5 = vld [vmem:[#allocation8] sm:$0xff]  ;;  %v519_v7 = vmax.f32 %v511_v61, 0.0  ;;  %v514_v11 = vadd.f32 %v850_v53, %v499_v4  ;;  %v517_v12 = vmax.f32 %v509_v1, 0.0 }
 0x17e   : > { %967 = vmatprep.subr.mxu0 %v534_v43  ;;  %1023 = vmatprep.subr.mxu1 %v534_v43  ;;  %v516_v8 = vmax.f32 %v508_v63, 0.0  ;;  %v521_v13 = vmax.f32 %v513_v2, 0.0  ;;  %v518_v14 = vmax.f32 %v510_v10, 0.0  ;;  %v851_v17 = vld [vmem:[%s1879_s24] ss:$0 sm:$0xff] }
 0x17f   : > { %968 = vmatpush3.msra.mxu0 %v534_v43  ;;  %1039 = vmatpush3.msra.mxu1 %v534_v43  ;;  %v520_v9 = vmax.f32 %v512_v0, 0.0  ;;  %v522_v15 = vmax.f32 %v514_v11, 0.0 }
 0x180   : > { %969 = vmatprep.subr.mxu0 %v533_v44  ;;  %1024 = vmatprep.subr.mxu1 %v533_v44 }
 0x181   : > { %970 = vmatpush3.msra.mxu0 %v533_v44  ;;  %1040 = vmatpush3.msra.mxu1 %v533_v44 }
 0x182   : > { %971 = vmatprep.subr.mxu0 %v532_v45  ;;  %1025 = vmatprep.subr.mxu1 %v532_v45 }
 0x183   : > { %972 = vmatpush3.msra.mxu0 %v532_v45  ;;  %1041 = vmatpush3.msra.mxu1 %v532_v45 }
 0x184   : > { %973 = vmatprep.subr.mxu0 %v531_v46  ;;  %1026 = vmatprep.subr.mxu1 %v531_v46 }
 0x185   : > { %974 = vmatpush3.msra.mxu0 %v531_v46  ;;  %1042 = vmatpush3.msra.mxu1 %v531_v46 }
 0x186   : > { %975 = vmatprep.subr.mxu0 %v530_v47  ;;  %1027 = vmatprep.subr.mxu1 %v530_v47 }
 0x187   : > { %976 = vmatpush3.msra.mxu0 %v530_v47  ;;  %1043 = vmatpush3.msra.mxu1 %v530_v47 }
 0x188   : > { %977 = vmatprep.subr.mxu0 %v529_v48  ;;  %1028 = vmatprep.subr.mxu1 %v529_v48 }
 0x189   : > { %978 = vmatpush3.msra.mxu0 %v529_v48  ;;  %1044 = vmatpush3.msra.mxu1 %v529_v48 }
 0x18a   : > { %979 = vmatprep.subr.mxu0 %v528_v49  ;;  %1029 = vmatprep.subr.mxu1 %v528_v49 }
 0x18b   : > { %980 = vmatpush3.msra.mxu0 %v528_v49  ;;  %1045 = vmatpush3.msra.mxu1 %v528_v49 }
 0x18c   : > { %981 = vmatprep.subr.mxu0 %v527_v50  ;;  %1030 = vmatprep.subr.mxu1 %v527_v50 }
 0x18d   : > { %982 = vmatpush3.msra.mxu0 %v527_v50  ;;  %1046 = vmatpush3.msra.mxu1 %v527_v50 }
 0x18e   : > { %983 = vmatprep.subr.mxu0 %v526_v51  ;;  %1031 = vmatprep.subr.mxu1 %v526_v51 }
 0x18f   : > { %984 = vmatpush3.msra.mxu0 %v526_v51  ;;  %1047 = vmatpush3.msra.mxu1 %v526_v51 }
 0x190   : > { %985 = vmatprep.subr.mxu0 %v525_v57  ;;  %1032 = vmatprep.subr.mxu1 %v525_v57 }
 0x191   : > { %986 = vmatpush3.msra.mxu0 %v525_v57  ;;  %1048 = vmatpush3.msra.mxu1 %v525_v57 }
 0x192   : > { %987 = vmatprep.subr.mxu0 %v524_v62  ;;  %1033 = vmatprep.subr.mxu1 %v524_v62 }
 0x193   : > { %988 = vmatpush3.msra.mxu0 %v524_v62  ;;  %1049 = vmatpush3.msra.mxu1 %v524_v62 }
 0x194   : > { %989 = vmatprep.subr.mxu0 %v523_v5  ;;  %1034 = vmatprep.subr.mxu1 %v523_v5 }
 0x195   : > { %990 = vmatpush3.msra.mxu0 %v523_v5  ;;  %1050 = vmatpush3.msra.mxu1 %v523_v5 }
 0x196   : > { %991 = vmatprep.mubr.f32.mxu0 %v515_v6  ;;  %997 = vmatprep.mubr.f32.mxu1 %v519_v7 }
 0x197   : > { %992 = vmatmul.mubr.f32.vlgmr.msra.gmra.mxu0 %v516_v8  ;;  %998 = vmatmul.mubr.f32.vlgmr.msra.gmra.mxu1 %v520_v9 }
 0x198   : > { %994 = vmatprep.mubr.f32.mxu0 %v517_v12  ;;  %1000 = vmatprep.mubr.f32.mxu1 %v521_v13 }
 0x19b   : > { %995 = vmatmul.mubr.f32.gmra.mxu0 %v518_v14  ;;  %1001 = vmatmul.mubr.f32.gmra.mxu1 %v522_v15 }
 0x257   : > { %v993_v16 = vpop.f32.mrf.mxu0  ;;  %v999_v18 = vpop.f32.mrf.mxu1 }
 0x258   : > { %v618_v21 = vadd.f32 %v993_v16, %v851_v17  ;;  %v638_v22 = vadd.f32 %v999_v18, %v851_v17 }
 0x259   : > { %v612_v19 = vpop.f32.mrf.mxu0  ;;  %v632_v20 = vpop.f32.mrf.mxu1 }
 0x25a   : > { %v613_v23 = vadd.f32 %v851_v17, %v612_v19  ;;  %v633_v24 = vadd.f32 %v851_v17, %v632_v20 }
 0x25b   : > { %v996_v25 = vpop.f32.mrf.mxu0  ;;  %v1002_v26 = vpop.f32.mrf.mxu1 }
 0x25c   : > { %v879_v27 = vpack.c.bf16 %v618_v21, %v613_v23  ;;  %v889_v28 = vpack.c.bf16 %v638_v22, %v633_v24  ;;  %v628_v31 = vadd.f32 %v996_v25, %v851_v17  ;;  %v648_v32 = vadd.f32 %v1002_v26, %v851_v17 }
 0x25d   : > { %v622_v29 = vpop.f32.mrf.mxu0  ;;  %v642_v30 = vpop.f32.mrf.mxu1 }
 0x25e   : > { %880 = vst [vmem:[%s1709_s16] sm:$0xff] %v879_v27   ;;  %897 = vst [vmem:[%s1709_s16 + $0x10] sm:$0xff] %v889_v28   ;;  %v623_v33 = vadd.f32 %v851_v17, %v622_v29  ;;  %v643_v34 = vadd.f32 %v851_v17, %v642_v30 }
 0x260   : > { %v884_v35 = vpack.c.bf16 %v628_v31, %v623_v33  ;;  %v894_v36 = vpack.c.bf16 %v648_v32, %v643_v34 }
 0x262   : > { %896 = vst [vmem:[%s1709_s16 + $0x8] sm:$0xff] %v884_v35   ;;  %898 = vst [vmem:[%s1709_s16 + $0x18] sm:$0xff] %v894_v36  }
 0x263 PF: > { %s1880_s4 = sld [smem:[#allocation17_spill]]  ;;  %s705_s21 = sshll.u32 %s1709_s16, 4  ;;  %s1742_s21 = int_to_ptr.vmem [resolvable:$true] %s705_s21 }
 0x264   : > { %s1882_s14 = sld [smem:[#allocation20_spill]]  ;;  %s1746_s13 = scalar_lea.sflag [#allocation5], %s310_s28 }
 0x265   : > { %s1883_s11 = sld [smem:[#allocation26_spill]]  ;;  %s1291_s2 = scalar_lea.vmem %s1742_s21, 512 }
 0x266   : > { %p1292_p5 = scmp.ne.s32.totalorder %s1742_s21, %s1291_s2  ;;  %s1454_s3 = smov [#allocation9]  }
 0x267   : > { %s1295_s27 = sshll.u32 %s1454_s3, 4  ;;  %s1296_s27 = int_to_ptr.vmem [resolvable:$false] %s1295_s27 }
 0x268   : > { %s1297_s18 = scalar_lea.vmem %s1296_s27, 1024  ;;  %p1298_p9 = scmp.lt.s32.totalorder %s1742_s21, %s1296_s27 }
 0x269   : > { %s875_s17 = sshll.u32 %s1880_s4, 9  ;;  %p1299_p4 = scmp.lt.s32.totalorder %s1297_s18, %s1291_s2 }
 0x26a   : > { %p1884_p11 = scmp.ne.s32.totalorder %s1882_s14, 0 }
 0x26b   : > { %s1739_s15 = scalar_lea.hbm %s1883_s11, %s875_s17  ;;  %p1300_p12 = por %p1299_p4, %p1298_p9 }
 0x26c   : > { %p1293_p0 = pnand %p1292_p5, %p1884_p11 }
 0x26e   : > { %p1294_p8 = pneg %p1293_p0 }
 0x270   : > { %p1301_p6 = pnand %p1300_p12, %p1294_p8 }
 0x272   : > { %1304 = shalt.err (!%p1301_p6)
}
 0x273   : > { %s1305_s28 = scalar_lea.hbm %s1739_s15, 512  ;;  %s1309_s4 = scalar_lea.hbm %s1883_s11, 2048 }
 0x274   : > { %p1306_p7 = scmp.ne.s32.totalorder %s1739_s15, %s1305_s28  ;;  %p1310_p10 = scmp.lt.s32.totalorder %s1739_s15, %s1883_s11 }
 0x275   : > { %p1311_p3 = scmp.lt.s32.totalorder %s1309_s4, %s1305_s28 }
 0x276   : > { %p1307_p13 = pnand %p1306_p7, %p1884_p11 }
 0x277   : > { %p1312_p1 = por %p1311_p3, %p1310_p10 }
 0x278   : > { %p1308_p2 = pneg %p1307_p13 }
 0x27a   : > { %p1313_p5 = pnand %p1312_p1, %p1308_p2 }
 0x27c   : > { %1316 = shalt.err (!%p1313_p5)
}
 0x27d   : > { %s1455_s19 = smov 64   ;;  %s1456_s10 = smov 4  }
 0x27e   : > { %1059 = dma.vmem_to_hbm [thread:$0]  (%p1884_p11), %s1742_s21, 512, %s1739_s15, %s1746_s13, %s1455_s19, %s1455_s19, %s1456_s10  }
 0x27f PF: > { %s1885_s2 = sld [smem:[#allocation14_spill]]  ;;  %p1079_p0 = scmp.ge.s32.totalorder %s1443_s6, 2 }
 0x280   : > { %s1886_s3 = sld [smem:[#allocation21_spill]] }
 0x285   : > { %s720_s27 = sand.u32 1, %s1885_s2  }
 0x286   : > { %p1887_p8 = scmp.ne.s32.totalorder %s1886_s3, 0  ;;  %s721_s18 = scalar_lea.sflag [#allocation5], %s720_s27 }
 0x288   : > { %p1073_p9 = pnand %p1079_p0, %p1887_p8 }
 0x28a   : > { %p1074_p4 = pneg %p1073_p9 }
 0x28c   : > { %1386 = dma.done.wait (%p1074_p4), %s721_s18, 512  }
 0x28d   : > { %1388 = vsyncadd (%p1074_p4), %s721_s18, 4294966784  ;;  %s24_s6 = sadd.s32 1, %s1443_s6   ;;  %s1889_s18 = sld [smem:[#allocation15_spill]] }
 0x28e   : > { %p1774_p12 = scmp.ge.s32.totalorder %s24_s6, 10   ;;  %s1890_s14 = sld [smem:[#allocation22_spill]] }
 0x28f   : > { %s1892_s19 = smov %s1399_s20  ;;  %s1893_s20 = smov %s1633_s5 }
 0x290   : > { %s1894_s21 = smov %s1407_s22  ;;  %s1895_s22 = smov %s1411_s23 }
 0x291   : > { %s1896_s23 = smov %s1663_s8  ;;  %s1897_s24 = smov %s1419_s25 }
 0x292   : > { %s1898_s25 = smov %s1423_s26  ;;  %s1899_s26 = smov %s1636_s12 }
 0x293   : > { %s1900_s27 = smov %s1435_s29  ;;  %s1901_s28 = smov %s1439_s30 }
 0x294   : > { %s1902_s29 = smov %s1890_s14  ;;  %s1903_s30 = smov %s1909_s9 }
 0x295   :  { %23 = sbr.rel (!%p1774_p12) target bundleno = 17 (0x11), region = 110 }
 0x29a   :  { %726 = vsyncpa [#allocation4], 1 }
 0x29b   :  { %728 = vsyncpa [#allocation4 + $0x1], 1 }
 0x29c   :  { %729 = vsyncpa [#allocation7], 1 }
 0x29d   :  { %731 = vsyncpa [#allocation7 + $0x1], 1 }
 0x29e   :  { %732 = vsyncpa [#allocation5], 1 }
 0x29f   :  { %734 = vsyncpa [#allocation5 + $0x1], 1 }

</bundles_post_ra>
